<compile_context>
chip_gen: v5e
topology: v5e:2x2
jax: 0.10.0
libtpu: 0.0.40
codegen_flags: <defaults>
</compile_context>

<pallas_src>
import math

import jax
import jax.numpy as jnp
from jax.experimental import pallas as pl
from jax.experimental.pallas import tpu as pltpu


def _value_linear_kernel(x_ref, wv_ref, bv_ref, o_ref):
    """out = x @ W_V + b_V  (== full AttentionModule output, see header)."""
    acc = jnp.dot(x_ref[...], wv_ref[...], preferred_element_type=jnp.float32)
    o_ref[...] = (acc + bv_ref[...].astype(jnp.float32)).astype(o_ref.dtype)


def _pick_tile_n(n):
    # Fixed large row tiles; 2048 rows x 128 f32 features is ~1 MiB per tile
    # (x) + 1 MiB (out), double-buffered ~4 MiB -> safe under v5e's 16 MiB
    # and v7x's 32 MiB scoped-VMEM defaults.  Prefer >=4 grid steps so v7x's
    # two TensorCores each get >=2 steps (keeps per-core double-buffering and
    # megacore sharding); otherwise accept >=2 steps; otherwise one block.
    for min_steps in (4, 2):
        for t in (2048, 1024, 512):
            if pl.cdiv(n, t) >= min_steps:
                return t
    return n  # single block (small N; normally the XLA fallback handles this)


def attention_module(x, wq, bq, wk, bk, wv, bv, *, out_dtype=None,
                     tile_n=None, min_pallas_rows=1024):
    """Pallas forward of AttentionModule.

    wq/bq/wk/bk are accepted for interface parity with the torch module but
    are mathematically dead: the softmax over the length-1 key axis is exactly
    1, so the output equals x @ wv + bv bit-for-bit (in f32).
    """
    del wq, bq, wk, bk  # dead parameters (softmax over a single element == 1)

    n, d_in = x.shape
    d_in_w, d_emb = wv.shape
    assert d_in_w == d_in, (wv.shape, x.shape)
    if out_dtype is None:
        out_dtype = x.dtype

    # Match the MXU input dtype to x's.  The weight is only 64 KiB and stays
    # VMEM-resident, so this cast is negligible.  We never cast x itself in
    # the wrapper -- that would add an extra HBM round trip on x.
    if wv.dtype != x.dtype:
        wv = wv.astype(x.dtype)

    # Tiny-N fallback: per-step (~0.35 us) and pallas_call launch overhead
    # dominate <1 us of data movement; let XLA fuse a plain GEMM instead.
    if tile_n is None and n < min_pallas_rows:
        out = jnp.dot(x, wv, preferred_element_type=jnp.float32)
        return (out + bv.astype(jnp.float32)).astype(out_dtype)

    if tile_n is None:
        tile_n = _pick_tile_n(n)
    grid = (pl.cdiv(n, tile_n),)  # partial last block handled by Pallas

    x_bytes = n * d_in * jnp.dtype(x.dtype).itemsize
    w_bytes = d_in * d_emb * jnp.dtype(wv.dtype).itemsize
    b_bytes = d_emb * jnp.dtype(bv.dtype).itemsize
    o_bytes = n * d_emb * jnp.dtype(out_dtype).itemsize
    cost = pl.CostEstimate(
        flops=2 * n * d_in * d_emb,
        bytes_accessed=x_bytes + w_bytes + b_bytes + o_bytes,
        transcendentals=0)

    return pl.pallas_call(
        _value_linear_kernel,
        out_shape=jax.ShapeDtypeStruct((n, d_emb), out_dtype),
        grid_spec=pltpu.PrefetchScalarGridSpec(
            num_scalar_prefetch=0,
            grid=grid,
            in_specs=[
                pl.BlockSpec((tile_n, d_in), lambda i: (i, 0)),  # x row tile
                pl.BlockSpec((d_in, d_emb), lambda i: (0, 0)),   # W_V (resident)
                pl.BlockSpec((1, d_emb), lambda i: (0, 0)),      # b_V (resident)
            ],
            out_specs=pl.BlockSpec((tile_n, d_emb), lambda i: (i, 0)),
        ),
        compiler_params=pltpu.CompilerParams(
            dimension_semantics=("parallel",)),
        cost_estimate=cost,
    )(x, wv, bv)


def reference(x, wq, bq, wk, bk, wv, bv):
    """Faithful JAX transcription of the torch forward (full Q/K/softmax path)."""
    q = x @ wq + bq
    k = x @ wk + bk
    v = x @ wv + bv
    scores = jnp.sum(q * k, axis=-1, keepdims=True) / jnp.sqrt(
        jnp.float32(wq.shape[1]))
    a = jax.nn.softmax(scores, axis=-1)  # softmax over a single element == 1
    return a * v


if __name__ == "__main__":
    # Module defaults: input_dim=128, embed_dim=128.
    D_IN, D_EMB = 128, 128

    key = jax.random.PRNGKey(0)
    kq, kbq, kk, kbk, kv, kbv, kx1, kx2 = jax.random.split(key, 8)

    # Deterministic params, mimicking nn.Linear's uniform(-1/sqrt(in), 1/sqrt(in)).
    bound = 1.0 / math.sqrt(D_IN)
    wq = jax.random.uniform(kq, (D_IN, D_EMB), jnp.float32, -bound, bound)
    bq = jax.random.uniform(kbq, (1, D_EMB), jnp.float32, -bound, bound)
    wk = jax.random.uniform(kk, (D_IN, D_EMB), jnp.float32, -bound, bound)
    bk = jax.random.uniform(kbk, (1, D_EMB), jnp.float32, -bound, bound)
    wv = jax.random.uniform(kv, (D_IN, D_EMB), jnp.float32, -bound, bound)
    bv = jax.random.uniform(kbv, (1, D_EMB), jnp.float32, -bound, bound)

    # Case 1: tiny batch -> plain-XLA fallback path (a kernel would be pure
    # launch/step overhead at this size).
    N_SMALL = 256
    x_small = jax.random.normal(kx1, (N_SMALL, D_IN), dtype=jnp.float32)
    out_small = jax.block_until_ready(
        attention_module(x_small, wq, bq, wk, bk, wv, bv))
    ref_small = reference(x_small, wq, bq, wk, bk, wv, bv)
    assert out_small.shape == (N_SMALL, D_EMB)
    assert jnp.allclose(out_small, ref_small, atol=1e-5, rtol=1e-5), \
        "small-N (XLA fallback) mismatch vs reference"

    # Case 2: ragged batch exercising the Pallas kernel (cdiv grid, partial
    # last block).  N=2056 -> tile_n=512, 5 grid steps, lane-dense output.
    N_BIG = 2056
    x_big = jax.random.normal(kx2, (N_BIG, D_IN), dtype=jnp.float32)
    out_big = jax.block_until_ready(
        attention_module(x_big, wq, bq, wk, bk, wv, bv))
    ref_big = reference(x_big, wq, bq, wk, bk, wv, bv)
    assert out_big.shape == (N_BIG, D_EMB)
    assert jnp.allclose(out_big, ref_big, atol=1e-5, rtol=1e-5), \
        "f32 Pallas path mismatch vs reference"

    # Case 3: caller supplies bf16 x and asks for bf16 output (halves HBM
    # traffic; MXU still accumulates in f32).  No wrapper-side cast of x.
    x_bf16 = x_big.astype(jnp.bfloat16)
    out_bf16 = jax.block_until_ready(
        attention_module(x_bf16, wq, bq, wk, bk, wv, bv,
                         out_dtype=jnp.bfloat16))
    assert out_bf16.shape == (N_BIG, D_EMB)
    assert out_bf16.dtype == jnp.bfloat16
    assert jnp.allclose(out_bf16.astype(jnp.float32), ref_big,
                        atol=5e-2, rtol=5e-2), "bf16 path mismatch vs reference"

    print("KERNEL_OK")
</pallas_src>

<mosaic_0001>
module attributes {stable_mosaic.version = 11 : i64} {
  func.func @_value_linear_kernel(%arg0: i32, %arg1: memref<512x128xf32, #tpu.memory_space<vmem>>, %arg2: memref<128x128xf32, #tpu.memory_space<vmem>>, %arg3: memref<1x128xf32, #tpu.memory_space<vmem>>, %arg4: memref<512x128xf32, #tpu.memory_space<vmem>>) attributes {dimension_semantics = [#tpu.dimension_semantics<parallel>], iteration_bounds = array<i64: 5>, scalar_prefetch = 0 : i64, scratch_operands = 0 : i64, tpu.core_type = #tpu.core_type<tc>, window_params = [{transform_indices = @transform_0, window_bounds = array<i64: 512, 128>}, {pipeline_mode = #tpu.pipeline_mode<synchronous>, transform_indices = @transform_1, window_bounds = array<i64: 128, 128>}, {pipeline_mode = #tpu.pipeline_mode<synchronous>, transform_indices = @transform_2, window_bounds = array<i64: 1, 128>}, {transform_indices = @transform_3, window_bounds = array<i64: 512, 128>}]} {
    %c0 = arith.constant 0 : index
    %c0_0 = arith.constant 0 : index
    %0 = vector.load %arg1[%c0, %c0_0] : memref<512x128xf32, #tpu.memory_space<vmem>>, vector<512x128xf32>
    %c0_1 = arith.constant 0 : index
    %c0_2 = arith.constant 0 : index
    %1 = vector.load %arg2[%c0_1, %c0_2] : memref<128x128xf32, #tpu.memory_space<vmem>>, vector<128x128xf32>
    %cst = arith.constant dense<0.000000e+00> : vector<512x128xf32>
    %2 = tpu.matmul %0, %1, %cst {dimension_numbers = #tpu.dot_dimension_numbers<[1], [0], [0], [1], [0, 0, 1, 1], [], []>} : vector<512x128xf32>, vector<128x128xf32>, vector<512x128xf32> -> vector<512x128xf32>
    %c0_3 = arith.constant 0 : index
    %c0_4 = arith.constant 0 : index
    %3 = vector.load %arg3[%c0_3, %c0_4] : memref<1x128xf32, #tpu.memory_space<vmem>>, vector<1x128xf32>
    %4 = vector.broadcast %3 : vector<1x128xf32> to vector<512x128xf32>
    %5 = arith.addf %2, %4 : vector<512x128xf32>
    %c0_5 = arith.constant 0 : index
    %c0_6 = arith.constant 0 : index
    %6 = vector.load %arg4[%c0_5, %c0_6] : memref<512x128xf32, #tpu.memory_space<vmem>>, vector<512x128xf32>
    tpu.vector_store %arg4[%c0_5, %c0_6], %5 {strides = array<i32>} : memref<512x128xf32, #tpu.memory_space<vmem>>, vector<512x128xf32>,
    return
  }
  func.func @transform_0(%arg0: i32) -> (i32, i32) {
    %c0_i32 = arith.constant 0 : i32
    %c0_i32_0 = arith.constant 0 : i32
    return %arg0, %c0_i32 : i32, i32
  }
  func.func @transform_1(%arg0: i32) -> (i32, i32) {
    %c0_i32 = arith.constant 0 : i32
    %c0_i32_0 = arith.constant 0 : i32
    %c0_i32_1 = arith.constant 0 : i32
    return %c0_i32, %c0_i32_0 : i32, i32
  }
  func.func @transform_2(%arg0: i32) -> (i32, i32) {
    %c0_i32 = arith.constant 0 : i32
    %c0_i32_0 = arith.constant 0 : i32
    %c0_i32_1 = arith.constant 0 : i32
    return %c0_i32, %c0_i32_0 : i32, i32
  }
  func.func @transform_3(%arg0: i32) -> (i32, i32) {
    %c0_i32 = arith.constant 0 : i32
    %c0_i32_0 = arith.constant 0 : i32
    return %arg0, %c0_i32 : i32, i32
  }
}

</mosaic_0001>

<bundles_post_ra>
// kernel: tpu_custom_call.1
= control target key start
LH: loop header
LB: loop body
LE: loop exit
PB: predicated region body
PF: predicated region fallthrough
CT: control target
= control target key end

     0   :  { %8 = vsyncpa [#allocation3], 0  ;;  %s1467_s0 = inlined_call_operand.hbm [shape: f32[2056,128], index: 0, kind: input, shape index: {}]   ;;  %s1468_s1 = inlined_call_operand.hbm [shape: f32[128,128], index: 1, kind: input, shape index: {}]   ;;  %s1469_s2 = inlined_call_operand.hbm [shape: f32[1,128], index: 2, kind: input, shape index: {}]   ;;  %s1470_s3 = inlined_call_operand.hbm [shape: f32[2056,128], index: 3, kind: output, shape index: {}]  }
   0x1   :  { %10 = vsyncpa [#allocation3 + $0x1], 0 }
   0x2   :  { %11 = vsyncpa [#allocation6], 0 }
   0x3   :  { %12 = vsyncpa [#allocation4], 0 }
   0x4   :  { %14 = vsyncpa [#allocation4 + $0x1], 0  ;;  %s1066_s12 = smov 0   ;;  %s1068_s13 = smov 0  }
   0x5   :  { %s1070_s14 = smov 0   ;;  %s1072_s15 = smov 0  }
   0x6 LB: > { %s1087_s16 = sadd.s32 4294967295, %s1034_s15   ;;  %s711_s17 = sadd.s32 4294967294, %s1034_s15   ;;  %s1034_s15 = sphi %s1072_s15, %s1485_s15   ;;  %s1030_s14 = sphi %s1070_s14, %s1484_s14   ;;  %s1026_s13 = sphi %s1068_s13, %s1483_s13   ;;  %s1022_s12 = sphi %s1066_s12, %s1482_s12  }
   0x7   : > { %s1091_s18 = sadd.s32 1, %s1034_s15   ;;  %s27_s19 = sadd.s32 1, %s1030_s14 }
   0x8   : > { %s24_s20 = ssub.s32 %s1034_s15, %s1091_s18  ;;  %p34_p0 = scmp.ne.s32.totalorder %s1030_s14, %s1026_s13 }
   0x9   : > { %p25_p1 = scmp.eq.s32.totalorder %s24_s20, 0  ;;  %p35_p2 = scmp.eq.s32.totalorder %s1034_s15, 0 }
   0xa   : > { %p40_p3 = scmp.ne.s32.totalorder %s1026_s13, %s1022_s12  ;;  %p1471_p4 = scmp.eq.s32.totalorder %s1087_s16, 0 }
   0xb   : > { %s1103_s21 = scalar_select %p25_p1, %s1030_s14, %s27_s19  }
   0xc   : > { %p1105_p5 = por %p35_p2, %p34_p0  ;;  %p1111_p6 = por %p1471_p4, %p40_p3 }
   0xd   : > { %p106_p7 = scmp.eq.s32.totalorder %s1087_s16, 4  ;;  %p112_p8 = scmp.eq.s32.totalorder %s711_s17, 4 }
   0xe   : > { %p712_p9 = scmp.ge.s32.totalorder %s1034_s15, 1  ;;  %p119_p10 = scmp.lt.s32.totalorder %s1034_s15, 6 }
   0xf   : > { %p1118_p11 = por %p106_p7, %p34_p0  ;;  %p1122_p12 = por %p112_p8, %p40_p3 }
  0x10   : > { %p1126_p13 = pnand %p712_p9, %p119_p10  ;;  %s130_s29 = sshll.u32 %s1468_s1, 4  ;;  %s131_s29 = int_to_ptr.hbm [resolvable:$true] %s130_s29 }
  0x11   : > { %s1475_s25 = scalar_select %p1122_p12, 1, 0 }
  0x12   : > { %p797_p1 = pneg %p1126_p13  ;;  %s1036_s30 = smov [#allocation5]  }
  0x13   : > { %s132_s4 = sshll.u32 %s1036_s30, 4  ;;  %s145_s7 = sshll.u32 %s1469_s2, 4  ;;  %s133_s4 = int_to_ptr.vmem [resolvable:$true] %s132_s4  ;;  %s146_s7 = int_to_ptr.hbm [resolvable:$true] %s145_s7 }
  0x14   : > { %p798_p0 = pnand %p797_p1, %p1471_p4  ;;  %s1037_s8 = smov 128  }
  0x15   : > { %s1038_s9 = smov 8   ;;  %s1039_s10 = smov [#allocation7]  }
  0x16   : > { %800 = dma.hbm_to_vmem [thread:$0]  (!%p798_p0), %s131_s29, 2048, %s133_s4, [#allocation6], %s1037_s8, %s1037_s8, %s1038_s9  }
  0x17   : > { %s147_s11 = sshll.u32 %s1039_s10, 4  ;;  %p715_p2 = scmp.ge.s32.totalorder %s1034_s15, 5  ;;  %s148_s11 = int_to_ptr.vmem [resolvable:$true] %s147_s11 }
  0x18   : > { %803 = dma.hbm_to_vmem [thread:$0]  (!%p798_p0), %s146_s7, 16, %s148_s11, [#allocation6]  }
  0x19   : > { %154 = sbr.rel (%p715_p2) target bundleno = 66 (0x42), region = 24 }
  0x1e   : > { %157 = sbr.rel (!%p1105_p5) target bundleno = 66 (0x42), region = 28  ;;  %s158_s17 = sand.u32 (%p1105_p5), 1, %s1030_s14  }
  0x1f   : > { %s717_s19 = sshll.u32 (%p1105_p5), %s1034_s15, 6  ;;  %s716_s20 = sshll.u32 (%p1105_p5), %s158_s17, 9 }
  0x20   : > { %s164_s27 = ssub.s32 (%p1105_p5), 257, %s717_s19  ;;  %s1148_s4 = scalar_lea.sflag (%p1105_p5), [#allocation3], %s158_s17 }
  0x21   : > { %p165_p3 = scmp.lt.s32.totalorder (%p1105_p5), %s164_s27, 64  ;;  %s162_s5 = scalar_lea.vmem (%p1105_p5), [#allocation2], %s716_s20 }
  0x23   : > { %s1487_s27 = smov (!%p165_p3, %s164_s27), 64 }
  0x24   : > { %s718_s28 = sshll.u32 %s1487_s27, 3 }
  0x25   : > { %s168_s29 = ssub.s32 512, %s718_s28 }
  0x26   : > { %s169_s30 = sshll.u32 %s168_s29, 4 }
  0x27   : > { %170 = vsyncadd %s1148_s4, %s169_s30  ;;  %p1151_p5 = scmp.ne.s32.totalorder %s718_s28, 0  ;;  %s737_s6 = sshll.u32 %s1034_s15, 9 }
  0x28   : > { %s173_s9 = scalar_lea.hbm %s1467_s0, %s737_s6  ;;  %s1159_s10 = sshll.u32 %s162_s5, 4  ;;  %s178_s10 = int_to_ptr.vmem [resolvable:$true] %s1159_s10 }
  0x29   : > { %s175_s11 = sshll.u32 %s173_s9, 4  ;;  %s722_s17 = sshll.u32 %s1487_s27, 7  ;;  %s1162_s11 = int_to_ptr.hbm [resolvable:$true] %s175_s11 }
  0x2a   : > { %s914_s19 = sshra.s32 %s1162_s11, 4  ;;  %s916_s20 = sshrl.u32 %s722_s17, 4  ;;  %s915_s19 = int_to_ptr.hbm [resolvable:$true] %s914_s19 }
  0x2b   : > { %s921_s28 = scalar_lea.hbm %s915_s19, %s916_s20  ;;  %s925_s5 = scalar_lea.hbm %s1467_s0, 2056 }
  0x2c   : > { %p922_p7 = scmp.ne.s32.totalorder %s915_s19, %s921_s28  ;;  %p926_p10 = scmp.lt.s32.totalorder %s915_s19, %s1467_s0 }
  0x2d   : > { %p927_p1 = scmp.lt.s32.totalorder %s925_s5, %s921_s28 }
  0x2e   : > { %p923_p8 = pnand %p922_p7, %p1151_p5 }
  0x2f   : > { %p928_p0 = por %p927_p1, %p926_p10 }
  0x30   : > { %p924_p9 = pneg %p923_p8 }
  0x32   : > { %p929_p2 = pnand %p928_p0, %p924_p9 }
  0x34   : > { %932 = shalt.err (!%p929_p2)
}
  0x35   : > { %s933_s8 = sshra.s32 %s178_s10, 4  ;;  %s1040_s29 = smov [#allocation2]   ;;  %s934_s8 = int_to_ptr.vmem [resolvable:$true] %s933_s8 }
  0x36   : > { %s940_s9 = scalar_lea.vmem %s934_s8, %s916_s20  ;;  %s944_s30 = scalar_lea.vmem %s1040_s29, 1024 }
  0x37   : > { %p941_p3 = scmp.ne.s32.totalorder %s934_s8, %s940_s9  ;;  %p946_p4 = scmp.lt.s32.totalorder %s944_s30, %s940_s9 }
  0x39   : > { %p942_p7 = pnand %p941_p3, %p1151_p5 }
  0x3b   : > { %p943_p8 = pneg %p942_p7 }
  0x3d   : > { %p948_p12 = pnand %p946_p4, %p943_p8 }
  0x3f   : > { %951 = shalt.err (!%p948_p12)
}
  0x40   : > { %s1041_s19 = smov 128   ;;  %s1042_s28 = smov 8  }
  0x41   : > { %183 = dma.hbm_to_vmem [thread:$0]  (%p1151_p5), %s1162_s11, %s722_s17, %s178_s10, %s1148_s4, %s1041_s19, %s1041_s19, %s1042_s28  }
  0x42 PF: > { %189 = sbr.rel (%p1126_p13) target bundleno = 394 (0x18a), region = 32  ;;  %s1191_s20 = sand.u32 (!%p1126_p13), 1, %s1026_s13  }
  0x43   : > { %s724_s5 = sshll.u32 (!%p1126_p13), %s1191_s20, 9  ;;  %s192_s6 = scalar_lea.sflag (!%p1126_p13), [#allocation3], %s1191_s20 }
  0x44   : > { %s1197_s7 = scalar_lea.vmem (!%p1126_p13), [#allocation2], %s724_s5 }
  0x47   : > { %1009 = dma.done.wait (%p1111_p6), %s192_s6, 8192  }
  0x48   : > { %1011 = vsyncadd (%p1111_p6), %s192_s6, 4294959104  ;;  %p1478_p4 = scmp.eq.s32.totalorder %s1087_s16, 0 }
  0x4a   : > { %1013 = dma.done.wait (%p1478_p4), [#allocation6], 2064   ;;  %p1479_p12 = pmov %p1478_p4 }
  0x4b   : > { %v318_v0 = vld [vmem:[#allocation5 + $0x78] sm:$0xff]  ;;  %v317_v1 = vld [vmem:[#allocation5 + $0x70] sm:$0xff]  ;;  %v316_v2 = vld [vmem:[#allocation5 + $0x68] sm:$0xff]  ;;  %s1277_s23 = scalar_lea.vmem [#allocation8], %s724_s5  ;;  %s597_s26 = scalar_lea.sflag [#allocation4], %s1191_s20 }
  0x4c   : > { %1015 = vsyncadd (%p1479_p12), [#allocation6], 4294965232  ;;  %740 = vmatpush.msra.mxu2 %v318_v0  ;;  %741 = vmatpush.msra.mxu3 %v318_v0  ;;  %v315_v3 = vld [vmem:[#allocation5 + $0x60] sm:$0xff]  ;;  %v314_v4 = vld [vmem:[#allocation5 + $0x58] sm:$0xff]  ;;  %s729_s27 = sshll.u32 (%p1118_p11), %s1087_s16, 6 }
  0x4d   : > { %323 = vmatpush.msra.mxu0 %v318_v0  ;;  %739 = vmatpush.msra.mxu1 %v318_v0  ;;  %v313_v5 = vld [vmem:[#allocation5 + $0x50] sm:$0xff]  ;;  %v312_v6 = vld [vmem:[#allocation5 + $0x48] sm:$0xff]  ;;  %v311_v7 = vld [vmem:[#allocation5 + $0x40] sm:$0xff]  ;;  %s605_s4 = ssub.s32 (%p1118_p11), 257, %s729_s27 }
  0x4e   : > { %743 = vmatpush.msra.mxu2 %v317_v1  ;;  %744 = vmatpush.msra.mxu3 %v317_v1  ;;  %v310_v8 = vld [vmem:[#allocation5 + $0x38] sm:$0xff]  ;;  %v309_v9 = vld [vmem:[#allocation5 + $0x30] sm:$0xff]  ;;  %v308_v10 = vld [vmem:[#allocation5 + $0x28] sm:$0xff]  ;;  %p606_p6 = scmp.lt.s32.totalorder (%p1118_p11), %s605_s4, 64 }
  0x4f   : > { %324 = vmatpush.msra.mxu0 %v317_v1  ;;  %742 = vmatpush.msra.mxu1 %v317_v1  ;;  %v307_v11 = vld [vmem:[#allocation5 + $0x20] sm:$0xff]  ;;  %v306_v12 = vld [vmem:[#allocation5 + $0x18] sm:$0xff]  ;;  %v305_v13 = vld [vmem:[#allocation5 + $0x10] sm:$0xff] }
  0x50   : > { %746 = vmatpush.msra.mxu2 %v316_v2  ;;  %747 = vmatpush.msra.mxu3 %v316_v2  ;;  %v304_v14 = vld [vmem:[#allocation5 + $0x8] sm:$0xff]  ;;  %v303_v15 = vld [vmem:[#allocation5] sm:$0xff]  ;;  %v273_v24 = vld [vmem:[%s1197_s7 + $0x110] sm:$0xff] }
  0x51   : > { %325 = vmatpush.msra.mxu0 %v316_v2  ;;  %745 = vmatpush.msra.mxu1 %v316_v2  ;;  %v271_v16 = vld [vmem:[%s1197_s7 + $0x100] sm:$0xff]  ;;  %v272_v20 = vld [vmem:[%s1197_s7 + $0x108] sm:$0xff]  ;;  %v289_v25 = vld [vmem:[%s1197_s7 + $0x190] sm:$0xff] }
  0x52   : > { %749 = vmatpush.msra.mxu2 %v315_v3  ;;  %750 = vmatpush.msra.mxu3 %v315_v3  ;;  %v287_v17 = vld [vmem:[%s1197_s7 + $0x180] sm:$0xff]  ;;  %v288_v21 = vld [vmem:[%s1197_s7 + $0x188] sm:$0xff]  ;;  %v241_v26 = vld [vmem:[%s1197_s7 + $0x10] sm:$0xff] }
  0x53   : > { %326 = vmatpush.msra.mxu0 %v315_v3  ;;  %748 = vmatpush.msra.mxu1 %v315_v3  ;;  %v239_v18 = vld [vmem:[%s1197_s7] sm:$0xff]  ;;  %v240_v22 = vld [vmem:[%s1197_s7 + $0x8] sm:$0xff]  ;;  %v257_v27 = vld [vmem:[%s1197_s7 + $0x90] sm:$0xff] }
  0x54   : > { %752 = vmatpush.msra.mxu2 %v314_v4  ;;  %753 = vmatpush.msra.mxu3 %v314_v4  ;;  %v255_v19 = vld [vmem:[%s1197_s7 + $0x80] sm:$0xff]  ;;  %v256_v23 = vld [vmem:[%s1197_s7 + $0x88] sm:$0xff]  ;;  %v274_v28 = vld [vmem:[%s1197_s7 + $0x118] sm:$0xff] }
  0x55   : > { %327 = vmatpush.msra.mxu0 %v314_v4  ;;  %751 = vmatpush.msra.mxu1 %v314_v4  ;;  %v290_v29 = vld [vmem:[%s1197_s7 + $0x198] sm:$0xff]  ;;  %v275_v32 = vld [vmem:[%s1197_s7 + $0x120] sm:$0xff]  ;;  %v276_v36 = vld [vmem:[%s1197_s7 + $0x128] sm:$0xff] }
  0x56   : > { %755 = vmatpush.msra.mxu2 %v313_v5  ;;  %756 = vmatpush.msra.mxu3 %v313_v5  ;;  %v242_v30 = vld [vmem:[%s1197_s7 + $0x18] sm:$0xff]  ;;  %v291_v33 = vld [vmem:[%s1197_s7 + $0x1a0] sm:$0xff]  ;;  %v292_v37 = vld [vmem:[%s1197_s7 + $0x1a8] sm:$0xff] }
  0x57   : > { %328 = vmatpush.msra.mxu0 %v313_v5  ;;  %754 = vmatpush.msra.mxu1 %v313_v5  ;;  %v258_v31 = vld [vmem:[%s1197_s7 + $0x98] sm:$0xff]  ;;  %v243_v34 = vld [vmem:[%s1197_s7 + $0x20] sm:$0xff]  ;;  %v244_v38 = vld [vmem:[%s1197_s7 + $0x28] sm:$0xff] }
  0x58   : > { %758 = vmatpush.msra.mxu2 %v312_v6  ;;  %759 = vmatpush.msra.mxu3 %v312_v6  ;;  %v259_v35 = vld [vmem:[%s1197_s7 + $0xa0] sm:$0xff]  ;;  %v260_v39 = vld [vmem:[%s1197_s7 + $0xa8] sm:$0xff]  ;;  %v277_v40 = vld [vmem:[%s1197_s7 + $0x130] sm:$0xff] }
  0x59   : > { %329 = vmatpush.msra.mxu0 %v312_v6  ;;  %757 = vmatpush.msra.mxu1 %v312_v6  ;;  %v293_v41 = vld [vmem:[%s1197_s7 + $0x1b0] sm:$0xff]  ;;  %v278_v44 = vld [vmem:[%s1197_s7 + $0x138] sm:$0xff]  ;;  %v279_v48 = vld [vmem:[%s1197_s7 + $0x140] sm:$0xff] }
  0x5a   : > { %761 = vmatpush.msra.mxu2 %v311_v7  ;;  %762 = vmatpush.msra.mxu3 %v311_v7  ;;  %v245_v42 = vld [vmem:[%s1197_s7 + $0x30] sm:$0xff]  ;;  %v294_v45 = vld [vmem:[%s1197_s7 + $0x1b8] sm:$0xff]  ;;  %v295_v49 = vld [vmem:[%s1197_s7 + $0x1c0] sm:$0xff] }
  0x5b   : > { %330 = vmatpush.msra.mxu0 %v311_v7  ;;  %760 = vmatpush.msra.mxu1 %v311_v7  ;;  %v261_v43 = vld [vmem:[%s1197_s7 + $0xb0] sm:$0xff]  ;;  %v246_v46 = vld [vmem:[%s1197_s7 + $0x38] sm:$0xff]  ;;  %v247_v50 = vld [vmem:[%s1197_s7 + $0x40] sm:$0xff] }
  0x5c   : > { %764 = vmatpush.msra.mxu2 %v310_v8  ;;  %765 = vmatpush.msra.mxu3 %v310_v8  ;;  %v262_v47 = vld [vmem:[%s1197_s7 + $0xb8] sm:$0xff]  ;;  %v263_v51 = vld [vmem:[%s1197_s7 + $0xc0] sm:$0xff]  ;;  %v280_v52 = vld [vmem:[%s1197_s7 + $0x148] sm:$0xff] }
  0x5d   : > { %331 = vmatpush.msra.mxu0 %v310_v8  ;;  %763 = vmatpush.msra.mxu1 %v310_v8  ;;  %v296_v53 = vld [vmem:[%s1197_s7 + $0x1c8] sm:$0xff]  ;;  %v281_v56 = vld [vmem:[%s1197_s7 + $0x150] sm:$0xff]  ;;  %v282_v60 = vld [vmem:[%s1197_s7 + $0x158] sm:$0xff] }
  0x5e   : > { %767 = vmatpush.msra.mxu2 %v309_v9  ;;  %768 = vmatpush.msra.mxu3 %v309_v9  ;;  %v248_v54 = vld [vmem:[%s1197_s7 + $0x48] sm:$0xff]  ;;  %v297_v57 = vld [vmem:[%s1197_s7 + $0x1d0] sm:$0xff]  ;;  %v298_v61 = vld [vmem:[%s1197_s7 + $0x1d8] sm:$0xff] }
  0x5f   : > { %332 = vmatpush.msra.mxu0 %v309_v9  ;;  %766 = vmatpush.msra.mxu1 %v309_v9  ;;  %v264_v55 = vld [vmem:[%s1197_s7 + $0xc8] sm:$0xff]  ;;  %v249_v58 = vld [vmem:[%s1197_s7 + $0x50] sm:$0xff]  ;;  %v250_v62 = vld [vmem:[%s1197_s7 + $0x58] sm:$0xff] }
  0x60   : > { %770 = vmatpush.msra.mxu2 %v308_v10  ;;  %771 = vmatpush.msra.mxu3 %v308_v10  ;;  %v265_v59 = vld [vmem:[%s1197_s7 + $0xd0] sm:$0xff]  ;;  %v266_v63 = vld [vmem:[%s1197_s7 + $0xd8] sm:$0xff]  ;;  %v283_v0 = vld [vmem:[%s1197_s7 + $0x160] sm:$0xff] }
  0x61   : > { %333 = vmatpush.msra.mxu0 %v308_v10  ;;  %769 = vmatpush.msra.mxu1 %v308_v10  ;;  %v299_v1 = vld [vmem:[%s1197_s7 + $0x1e0] sm:$0xff]  ;;  %v284_v4 = vld [vmem:[%s1197_s7 + $0x168] sm:$0xff]  ;;  %v285_v8 = vld [vmem:[%s1197_s7 + $0x170] sm:$0xff] }
  0x62   : > { %773 = vmatpush.msra.mxu2 %v307_v11  ;;  %774 = vmatpush.msra.mxu3 %v307_v11  ;;  %v251_v2 = vld [vmem:[%s1197_s7 + $0x60] sm:$0xff]  ;;  %v300_v5 = vld [vmem:[%s1197_s7 + $0x1e8] sm:$0xff]  ;;  %v301_v9 = vld [vmem:[%s1197_s7 + $0x1f0] sm:$0xff] }
  0x63   : > { %334 = vmatpush.msra.mxu0 %v307_v11  ;;  %772 = vmatpush.msra.mxu1 %v307_v11  ;;  %v267_v3 = vld [vmem:[%s1197_s7 + $0xe0] sm:$0xff]  ;;  %v252_v6 = vld [vmem:[%s1197_s7 + $0x68] sm:$0xff]  ;;  %v253_v10 = vld [vmem:[%s1197_s7 + $0x70] sm:$0xff] }
  0x64   : > { %776 = vmatpush.msra.mxu2 %v306_v12  ;;  %777 = vmatpush.msra.mxu3 %v306_v12  ;;  %v268_v7 = vld [vmem:[%s1197_s7 + $0xe8] sm:$0xff]  ;;  %v269_v11 = vld [vmem:[%s1197_s7 + $0xf0] sm:$0xff] }
  0x65   : > { %335 = vmatpush.msra.mxu0 %v306_v12  ;;  %775 = vmatpush.msra.mxu1 %v306_v12  ;;  %v286_v12 = vld [vmem:[%s1197_s7 + $0x178] sm:$0xff] }
  0x66   : > { %779 = vmatpush.msra.mxu2 %v305_v13  ;;  %780 = vmatpush.msra.mxu3 %v305_v13 }
  0x67   : > { %336 = vmatpush.msra.mxu0 %v305_v13  ;;  %778 = vmatpush.msra.mxu1 %v305_v13  ;;  %v302_v13 = vld [vmem:[%s1197_s7 + $0x1f8] sm:$0xff] }
  0x68   : > { %782 = vmatpush.msra.mxu2 %v304_v14  ;;  %783 = vmatpush.msra.mxu3 %v304_v14 }
  0x69   : > { %337 = vmatpush.msra.mxu0 %v304_v14  ;;  %781 = vmatpush.msra.mxu1 %v304_v14  ;;  %v254_v14 = vld [vmem:[%s1197_s7 + $0x78] sm:$0xff] }
  0x6a   : > { %785 = vmatpush.msra.mxu2 %v303_v15  ;;  %786 = vmatpush.msra.mxu3 %v303_v15 }
  0x6b   : > { %435 = vmatmul.f32.vlgmr.msra.gmra.mxu2 %v271_v16  ;;  %483 = vmatmul.f32.vlgmr.msra.gmra.mxu3 %v287_v17  ;;  %v1271_v16 = vld [vmem:[#allocation7] ss:$0 sm:$0xff] }
  0x6c   : > { %338 = vmatpush.msra.mxu0 %v303_v15  ;;  %784 = vmatpush.msra.mxu1 %v303_v15  ;;  %v270_v15 = vld [vmem:[%s1197_s7 + $0xf8] sm:$0xff] }
  0x6d   : > { %339 = vmatmul.f32.vlgmr.msra.gmra.mxu0 %v239_v18  ;;  %387 = vmatmul.f32.vlgmr.msra.gmra.mxu1 %v255_v19 }
  0x73   : > { %438 = vmatmul.f32.gmra.mxu2 %v272_v20  ;;  %486 = vmatmul.f32.gmra.mxu3 %v288_v21 }
  0x75   : > { %342 = vmatmul.f32.gmra.mxu0 %v240_v22  ;;  %390 = vmatmul.f32.gmra.mxu1 %v256_v23 }
  0x7b   : > { %441 = vmatmul.f32.gmra.mxu2 %v273_v24  ;;  %489 = vmatmul.f32.gmra.mxu3 %v289_v25 }
  0x7d   : > { %345 = vmatmul.f32.gmra.mxu0 %v241_v26  ;;  %393 = vmatmul.f32.gmra.mxu1 %v257_v27 }
  0x83   : > { %444 = vmatmul.f32.gmra.mxu2 %v274_v28  ;;  %492 = vmatmul.f32.gmra.mxu3 %v290_v29 }
  0x85   : > { %348 = vmatmul.f32.gmra.mxu0 %v242_v30  ;;  %396 = vmatmul.f32.gmra.mxu1 %v258_v31 }
  0x8b   : > { %447 = vmatmul.f32.gmra.mxu2 %v275_v32  ;;  %495 = vmatmul.f32.gmra.mxu3 %v291_v33 }
  0x8d   : > { %351 = vmatmul.f32.gmra.mxu0 %v243_v34  ;;  %399 = vmatmul.f32.gmra.mxu1 %v259_v35 }
  0x93   : > { %450 = vmatmul.f32.gmra.mxu2 %v276_v36  ;;  %498 = vmatmul.f32.gmra.mxu3 %v292_v37 }
  0x95   : > { %354 = vmatmul.f32.gmra.mxu0 %v244_v38  ;;  %402 = vmatmul.f32.gmra.mxu1 %v260_v39 }
  0x9b   : > { %453 = vmatmul.f32.gmra.mxu2 %v277_v40  ;;  %501 = vmatmul.f32.gmra.mxu3 %v293_v41 }
  0x9d   : > { %357 = vmatmul.f32.gmra.mxu0 %v245_v42  ;;  %405 = vmatmul.f32.gmra.mxu1 %v261_v43 }
  0xa3   : > { %456 = vmatmul.f32.gmra.mxu2 %v278_v44  ;;  %504 = vmatmul.f32.gmra.mxu3 %v294_v45 }
  0xa5   : > { %360 = vmatmul.f32.gmra.mxu0 %v246_v46  ;;  %408 = vmatmul.f32.gmra.mxu1 %v262_v47 }
  0xab   : > { %459 = vmatmul.f32.gmra.mxu2 %v279_v48  ;;  %507 = vmatmul.f32.gmra.mxu3 %v295_v49 }
  0xad   : > { %363 = vmatmul.f32.gmra.mxu0 %v247_v50  ;;  %411 = vmatmul.f32.gmra.mxu1 %v263_v51 }
  0xb3   : > { %462 = vmatmul.f32.gmra.mxu2 %v280_v52  ;;  %510 = vmatmul.f32.gmra.mxu3 %v296_v53 }
  0xb5   : > { %366 = vmatmul.f32.gmra.mxu0 %v248_v54  ;;  %414 = vmatmul.f32.gmra.mxu1 %v264_v55 }
  0xbb   : > { %465 = vmatmul.f32.gmra.mxu2 %v281_v56  ;;  %513 = vmatmul.f32.gmra.mxu3 %v297_v57 }
  0xbd   : > { %369 = vmatmul.f32.gmra.mxu0 %v249_v58  ;;  %417 = vmatmul.f32.gmra.mxu1 %v265_v59 }
  0xc3   : > { %468 = vmatmul.f32.gmra.mxu2 %v282_v60  ;;  %516 = vmatmul.f32.gmra.mxu3 %v298_v61 }
  0xc5   : > { %372 = vmatmul.f32.gmra.mxu0 %v250_v62  ;;  %420 = vmatmul.f32.gmra.mxu1 %v266_v63 }
  0xcb   : > { %471 = vmatmul.f32.gmra.mxu2 %v283_v0  ;;  %519 = vmatmul.f32.gmra.mxu3 %v299_v1 }
  0xcd   : > { %375 = vmatmul.f32.gmra.mxu0 %v251_v2  ;;  %423 = vmatmul.f32.gmra.mxu1 %v267_v3 }
  0xd3   : > { %474 = vmatmul.f32.gmra.mxu2 %v284_v4  ;;  %522 = vmatmul.f32.gmra.mxu3 %v300_v5 }
  0xd5   : > { %378 = vmatmul.f32.gmra.mxu0 %v252_v6  ;;  %426 = vmatmul.f32.gmra.mxu1 %v268_v7 }
  0xdb   : > { %477 = vmatmul.f32.gmra.mxu2 %v285_v8  ;;  %525 = vmatmul.f32.gmra.mxu3 %v301_v9 }
  0xdd   : > { %381 = vmatmul.f32.gmra.mxu0 %v253_v10  ;;  %429 = vmatmul.f32.gmra.mxu1 %v269_v11 }
  0xe3   : > { %480 = vmatmul.f32.gmra.mxu2 %v286_v12  ;;  %528 = vmatmul.f32.gmra.mxu3 %v302_v13 }
  0xe5   : > { %384 = vmatmul.f32.gmra.mxu0 %v254_v14  ;;  %432 = vmatmul.f32.gmra.mxu1 %v270_v15 }
  0xea   : > { %v340_v17 = vpop.f32.mrf.mxu0  ;;  %v388_v18 = vpop.f32.mrf.mxu1 }
  0xeb   : > { %v341_v19 = vadd.f32 %v1271_v16, %v340_v17  ;;  %v389_v20 = vadd.f32 %v1271_v16, %v388_v18 }
  0xed   : > { %532 = vst [vmem:[%s1277_s23] sm:$0xff] %v341_v19 }
  0xee   : > { %548 = vst [vmem:[%s1277_s23 + $0x80] sm:$0xff] %v389_v20  ;;  %v436_v21 = vpop.f32.mrf.mxu2  ;;  %v484_v22 = vpop.f32.mrf.mxu3 }
  0xef   : > { %v437_v23 = vadd.f32 %v1271_v16, %v436_v21  ;;  %v485_v24 = vadd.f32 %v1271_v16, %v484_v22 }
  0xf1   : > { %564 = vst [vmem:[%s1277_s23 + $0x100] sm:$0xff] %v437_v23 }
  0xf2   : > { %580 = vst [vmem:[%s1277_s23 + $0x180] sm:$0xff] %v485_v24  ;;  %v343_v25 = vpop.f32.mrf.mxu0  ;;  %v391_v26 = vpop.f32.mrf.mxu1 }
  0xf3   : > { %v344_v27 = vadd.f32 %v1271_v16, %v343_v25  ;;  %v392_v28 = vadd.f32 %v1271_v16, %v391_v26 }
  0xf5   : > { %533 = vst [vmem:[%s1277_s23 + $0x8] sm:$0xff] %v344_v27 }
  0xf6   : > { %549 = vst [vmem:[%s1277_s23 + $0x88] sm:$0xff] %v392_v28  ;;  %v439_v29 = vpop.f32.mrf.mxu2  ;;  %v487_v30 = vpop.f32.mrf.mxu3 }
  0xf7   : > { %v440_v31 = vadd.f32 %v1271_v16, %v439_v29  ;;  %v488_v32 = vadd.f32 %v1271_v16, %v487_v30 }
  0xf9   : > { %565 = vst [vmem:[%s1277_s23 + $0x108] sm:$0xff] %v440_v31 }
  0xfa   : > { %581 = vst [vmem:[%s1277_s23 + $0x188] sm:$0xff] %v488_v32  ;;  %v346_v33 = vpop.f32.mrf.mxu0  ;;  %v394_v34 = vpop.f32.mrf.mxu1 }
  0xfb   : > { %v347_v35 = vadd.f32 %v1271_v16, %v346_v33  ;;  %v395_v36 = vadd.f32 %v1271_v16, %v394_v34 }
  0xfd   : > { %534 = vst [vmem:[%s1277_s23 + $0x10] sm:$0xff] %v347_v35 }
  0xfe   : > { %550 = vst [vmem:[%s1277_s23 + $0x90] sm:$0xff] %v395_v36  ;;  %v442_v37 = vpop.f32.mrf.mxu2  ;;  %v490_v38 = vpop.f32.mrf.mxu3 }
  0xff   : > { %v443_v39 = vadd.f32 %v1271_v16, %v442_v37  ;;  %v491_v40 = vadd.f32 %v1271_v16, %v490_v38 }
 0x101   : > { %566 = vst [vmem:[%s1277_s23 + $0x110] sm:$0xff] %v443_v39 }
 0x102   : > { %582 = vst [vmem:[%s1277_s23 + $0x190] sm:$0xff] %v491_v40  ;;  %v349_v41 = vpop.f32.mrf.mxu0  ;;  %v397_v42 = vpop.f32.mrf.mxu1 }
 0x103   : > { %v350_v43 = vadd.f32 %v1271_v16, %v349_v41  ;;  %v398_v44 = vadd.f32 %v1271_v16, %v397_v42 }
 0x105   : > { %535 = vst [vmem:[%s1277_s23 + $0x18] sm:$0xff] %v350_v43 }
 0x106   : > { %551 = vst [vmem:[%s1277_s23 + $0x98] sm:$0xff] %v398_v44  ;;  %v445_v45 = vpop.f32.mrf.mxu2  ;;  %v493_v46 = vpop.f32.mrf.mxu3 }
 0x107   : > { %v446_v47 = vadd.f32 %v1271_v16, %v445_v45  ;;  %v494_v48 = vadd.f32 %v1271_v16, %v493_v46 }
 0x109   : > { %567 = vst [vmem:[%s1277_s23 + $0x118] sm:$0xff] %v446_v47 }
 0x10a   : > { %583 = vst [vmem:[%s1277_s23 + $0x198] sm:$0xff] %v494_v48  ;;  %v352_v49 = vpop.f32.mrf.mxu0  ;;  %v400_v50 = vpop.f32.mrf.mxu1 }
 0x10b   : > { %v353_v51 = vadd.f32 %v1271_v16, %v352_v49  ;;  %v401_v52 = vadd.f32 %v1271_v16, %v400_v50 }
 0x10d   : > { %536 = vst [vmem:[%s1277_s23 + $0x20] sm:$0xff] %v353_v51 }
 0x10e   : > { %552 = vst [vmem:[%s1277_s23 + $0xa0] sm:$0xff] %v401_v52  ;;  %v448_v53 = vpop.f32.mrf.mxu2  ;;  %v496_v54 = vpop.f32.mrf.mxu3 }
 0x10f   : > { %v449_v55 = vadd.f32 %v1271_v16, %v448_v53  ;;  %v497_v56 = vadd.f32 %v1271_v16, %v496_v54 }
 0x111   : > { %568 = vst [vmem:[%s1277_s23 + $0x120] sm:$0xff] %v449_v55 }
 0x112   : > { %584 = vst [vmem:[%s1277_s23 + $0x1a0] sm:$0xff] %v497_v56  ;;  %v355_v57 = vpop.f32.mrf.mxu0  ;;  %v403_v58 = vpop.f32.mrf.mxu1 }
 0x113   : > { %v356_v59 = vadd.f32 %v1271_v16, %v355_v57  ;;  %v404_v60 = vadd.f32 %v1271_v16, %v403_v58 }
 0x115   : > { %537 = vst [vmem:[%s1277_s23 + $0x28] sm:$0xff] %v356_v59 }
 0x116   : > { %553 = vst [vmem:[%s1277_s23 + $0xa8] sm:$0xff] %v404_v60  ;;  %v451_v61 = vpop.f32.mrf.mxu2  ;;  %v499_v62 = vpop.f32.mrf.mxu3 }
 0x117   : > { %v452_v63 = vadd.f32 %v1271_v16, %v451_v61  ;;  %v500_v0 = vadd.f32 %v1271_v16, %v499_v62 }
 0x119   : > { %569 = vst [vmem:[%s1277_s23 + $0x128] sm:$0xff] %v452_v63 }
 0x11a   : > { %585 = vst [vmem:[%s1277_s23 + $0x1a8] sm:$0xff] %v500_v0  ;;  %v358_v1 = vpop.f32.mrf.mxu0  ;;  %v406_v2 = vpop.f32.mrf.mxu1 }
 0x11b   : > { %v359_v3 = vadd.f32 %v1271_v16, %v358_v1  ;;  %v407_v4 = vadd.f32 %v1271_v16, %v406_v2 }
 0x11d   : > { %538 = vst [vmem:[%s1277_s23 + $0x30] sm:$0xff] %v359_v3 }
 0x11e   : > { %554 = vst [vmem:[%s1277_s23 + $0xb0] sm:$0xff] %v407_v4  ;;  %v454_v5 = vpop.f32.mrf.mxu2  ;;  %v502_v6 = vpop.f32.mrf.mxu3 }
 0x11f   : > { %v455_v7 = vadd.f32 %v1271_v16, %v454_v5  ;;  %v503_v8 = vadd.f32 %v1271_v16, %v502_v6 }
 0x121   : > { %570 = vst [vmem:[%s1277_s23 + $0x130] sm:$0xff] %v455_v7 }
 0x122   : > { %586 = vst [vmem:[%s1277_s23 + $0x1b0] sm:$0xff] %v503_v8  ;;  %v361_v9 = vpop.f32.mrf.mxu0  ;;  %v409_v10 = vpop.f32.mrf.mxu1 }
 0x123   : > { %v362_v11 = vadd.f32 %v1271_v16, %v361_v9  ;;  %v410_v12 = vadd.f32 %v1271_v16, %v409_v10 }
 0x125   : > { %539 = vst [vmem:[%s1277_s23 + $0x38] sm:$0xff] %v362_v11 }
 0x126   : > { %555 = vst [vmem:[%s1277_s23 + $0xb8] sm:$0xff] %v410_v12  ;;  %v457_v13 = vpop.f32.mrf.mxu2  ;;  %v505_v14 = vpop.f32.mrf.mxu3 }
 0x127   : > { %v458_v15 = vadd.f32 %v1271_v16, %v457_v13  ;;  %v506_v17 = vadd.f32 %v1271_v16, %v505_v14 }
 0x129   : > { %571 = vst [vmem:[%s1277_s23 + $0x138] sm:$0xff] %v458_v15 }
 0x12a   : > { %587 = vst [vmem:[%s1277_s23 + $0x1b8] sm:$0xff] %v506_v17  ;;  %v364_v18 = vpop.f32.mrf.mxu0  ;;  %v412_v19 = vpop.f32.mrf.mxu1 }
 0x12b   : > { %v365_v20 = vadd.f32 %v1271_v16, %v364_v18  ;;  %v413_v21 = vadd.f32 %v1271_v16, %v412_v19 }
 0x12d   : > { %540 = vst [vmem:[%s1277_s23 + $0x40] sm:$0xff] %v365_v20 }
 0x12e   : > { %556 = vst [vmem:[%s1277_s23 + $0xc0] sm:$0xff] %v413_v21  ;;  %v460_v22 = vpop.f32.mrf.mxu2  ;;  %v508_v23 = vpop.f32.mrf.mxu3 }
 0x12f   : > { %v461_v24 = vadd.f32 %v1271_v16, %v460_v22  ;;  %v509_v25 = vadd.f32 %v1271_v16, %v508_v23 }
 0x131   : > { %572 = vst [vmem:[%s1277_s23 + $0x140] sm:$0xff] %v461_v24 }
 0x132   : > { %588 = vst [vmem:[%s1277_s23 + $0x1c0] sm:$0xff] %v509_v25  ;;  %v367_v26 = vpop.f32.mrf.mxu0  ;;  %v415_v27 = vpop.f32.mrf.mxu1 }
 0x133   : > { %v368_v28 = vadd.f32 %v1271_v16, %v367_v26  ;;  %v416_v29 = vadd.f32 %v1271_v16, %v415_v27 }
 0x135   : > { %541 = vst [vmem:[%s1277_s23 + $0x48] sm:$0xff] %v368_v28 }
 0x136   : > { %557 = vst [vmem:[%s1277_s23 + $0xc8] sm:$0xff] %v416_v29  ;;  %v463_v30 = vpop.f32.mrf.mxu2  ;;  %v511_v31 = vpop.f32.mrf.mxu3 }
 0x137   : > { %v464_v32 = vadd.f32 %v1271_v16, %v463_v30  ;;  %v512_v33 = vadd.f32 %v1271_v16, %v511_v31 }
 0x139   : > { %573 = vst [vmem:[%s1277_s23 + $0x148] sm:$0xff] %v464_v32 }
 0x13a   : > { %589 = vst [vmem:[%s1277_s23 + $0x1c8] sm:$0xff] %v512_v33  ;;  %v370_v34 = vpop.f32.mrf.mxu0  ;;  %v418_v35 = vpop.f32.mrf.mxu1 }
 0x13b   : > { %v371_v36 = vadd.f32 %v1271_v16, %v370_v34  ;;  %v419_v37 = vadd.f32 %v1271_v16, %v418_v35 }
 0x13d   : > { %542 = vst [vmem:[%s1277_s23 + $0x50] sm:$0xff] %v371_v36 }
 0x13e   : > { %558 = vst [vmem:[%s1277_s23 + $0xd0] sm:$0xff] %v419_v37  ;;  %v466_v38 = vpop.f32.mrf.mxu2  ;;  %v514_v39 = vpop.f32.mrf.mxu3 }
 0x13f   : > { %v467_v40 = vadd.f32 %v1271_v16, %v466_v38  ;;  %v515_v41 = vadd.f32 %v1271_v16, %v514_v39 }
 0x141   : > { %574 = vst [vmem:[%s1277_s23 + $0x150] sm:$0xff] %v467_v40 }
 0x142   : > { %590 = vst [vmem:[%s1277_s23 + $0x1d0] sm:$0xff] %v515_v41  ;;  %v373_v42 = vpop.f32.mrf.mxu0  ;;  %v421_v43 = vpop.f32.mrf.mxu1 }
 0x143   : > { %v374_v44 = vadd.f32 %v1271_v16, %v373_v42  ;;  %v422_v45 = vadd.f32 %v1271_v16, %v421_v43 }
 0x145   : > { %543 = vst [vmem:[%s1277_s23 + $0x58] sm:$0xff] %v374_v44 }
 0x146   : > { %559 = vst [vmem:[%s1277_s23 + $0xd8] sm:$0xff] %v422_v45  ;;  %v469_v46 = vpop.f32.mrf.mxu2  ;;  %v517_v47 = vpop.f32.mrf.mxu3 }
 0x147   : > { %v470_v48 = vadd.f32 %v1271_v16, %v469_v46  ;;  %v518_v49 = vadd.f32 %v1271_v16, %v517_v47 }
 0x149   : > { %575 = vst [vmem:[%s1277_s23 + $0x158] sm:$0xff] %v470_v48 }
 0x14a   : > { %591 = vst [vmem:[%s1277_s23 + $0x1d8] sm:$0xff] %v518_v49  ;;  %v376_v50 = vpop.f32.mrf.mxu0  ;;  %v424_v51 = vpop.f32.mrf.mxu1 }
 0x14b   : > { %v377_v52 = vadd.f32 %v1271_v16, %v376_v50  ;;  %v425_v53 = vadd.f32 %v1271_v16, %v424_v51 }
 0x14d   : > { %544 = vst [vmem:[%s1277_s23 + $0x60] sm:$0xff] %v377_v52 }
 0x14e   : > { %560 = vst [vmem:[%s1277_s23 + $0xe0] sm:$0xff] %v425_v53  ;;  %v472_v54 = vpop.f32.mrf.mxu2  ;;  %v520_v55 = vpop.f32.mrf.mxu3 }
 0x14f   : > { %v473_v56 = vadd.f32 %v1271_v16, %v472_v54  ;;  %v521_v57 = vadd.f32 %v1271_v16, %v520_v55 }
 0x151   : > { %576 = vst [vmem:[%s1277_s23 + $0x160] sm:$0xff] %v473_v56 }
 0x152   : > { %592 = vst [vmem:[%s1277_s23 + $0x1e0] sm:$0xff] %v521_v57  ;;  %v379_v58 = vpop.f32.mrf.mxu0  ;;  %v427_v59 = vpop.f32.mrf.mxu1 }
 0x153   : > { %v380_v60 = vadd.f32 %v1271_v16, %v379_v58  ;;  %v428_v61 = vadd.f32 %v1271_v16, %v427_v59 }
 0x155   : > { %545 = vst [vmem:[%s1277_s23 + $0x68] sm:$0xff] %v380_v60 }
 0x156   : > { %561 = vst [vmem:[%s1277_s23 + $0xe8] sm:$0xff] %v428_v61  ;;  %v475_v62 = vpop.f32.mrf.mxu2  ;;  %v523_v63 = vpop.f32.mrf.mxu3 }
 0x157   : > { %v476_v0 = vadd.f32 %v1271_v16, %v475_v62  ;;  %v524_v1 = vadd.f32 %v1271_v16, %v523_v63 }
 0x159   : > { %577 = vst [vmem:[%s1277_s23 + $0x168] sm:$0xff] %v476_v0 }
 0x15a   : > { %593 = vst [vmem:[%s1277_s23 + $0x1e8] sm:$0xff] %v524_v1  ;;  %v382_v2 = vpop.f32.mrf.mxu0  ;;  %v430_v3 = vpop.f32.mrf.mxu1 }
 0x15b   : > { %v383_v4 = vadd.f32 %v1271_v16, %v382_v2  ;;  %v431_v5 = vadd.f32 %v1271_v16, %v430_v3 }
 0x15d   : > { %546 = vst [vmem:[%s1277_s23 + $0x70] sm:$0xff] %v383_v4 }
 0x15e   : > { %562 = vst [vmem:[%s1277_s23 + $0xf0] sm:$0xff] %v431_v5  ;;  %v478_v6 = vpop.f32.mrf.mxu2  ;;  %v526_v7 = vpop.f32.mrf.mxu3 }
 0x15f   : > { %v479_v8 = vadd.f32 %v1271_v16, %v478_v6  ;;  %v527_v9 = vadd.f32 %v1271_v16, %v526_v7 }
 0x161   : > { %578 = vst [vmem:[%s1277_s23 + $0x170] sm:$0xff] %v479_v8 }
 0x162   : > { %594 = vst [vmem:[%s1277_s23 + $0x1f0] sm:$0xff] %v527_v9  ;;  %v385_v10 = vpop.f32.mrf.mxu0  ;;  %v433_v11 = vpop.f32.mrf.mxu1 }
 0x163   : > { %v386_v12 = vadd.f32 %v1271_v16, %v385_v10  ;;  %v434_v13 = vadd.f32 %v1271_v16, %v433_v11 }
 0x165   : > { %547 = vst [vmem:[%s1277_s23 + $0x78] sm:$0xff] %v386_v12 }
 0x166   : > { %563 = vst [vmem:[%s1277_s23 + $0xf8] sm:$0xff] %v434_v13  ;;  %v481_v14 = vpop.f32.mrf.mxu2  ;;  %v529_v15 = vpop.f32.mrf.mxu3  ;;  %603 = sbr.rel (!%p1118_p11) target bundleno = 394 (0x18a), region = 48 }
 0x167   : > { %v482_v17 = vadd.f32 %v1271_v16, %v481_v14  ;;  %v530_v18 = vadd.f32 %v1271_v16, %v529_v15 }
 0x169   : > { %579 = vst [vmem:[%s1277_s23 + $0x178] sm:$0xff] %v482_v17 }
 0x16a   : > { %595 = vst [vmem:[%s1277_s23 + $0x1f8] sm:$0xff] %v530_v18 }
 0x16b   : > { %s1489_s4 = smov (!%p606_p6, %s605_s4), 64 }
 0x16c   : > { %s730_s22 = sshll.u32 %s1489_s4, 3 }
 0x16d   : > { %s609_s10 = ssub.s32 512, %s730_s22 }
 0x16e   : > { %s610_s11 = sshll.u32 %s609_s10, 4 }
 0x16f   : > { %611 = vsyncadd %s597_s26, %s610_s11  ;;  %p1414_p13 = scmp.ne.s32.totalorder %s730_s22, 0  ;;  %s738_s17 = sshll.u32 %s1087_s16, 9 }
 0x170   : > { %s614_s29 = scalar_lea.hbm %s1470_s3, %s738_s17  ;;  %s616_s30 = sshll.u32 %s1277_s23, 4  ;;  %s1423_s30 = int_to_ptr.vmem [resolvable:$true] %s616_s30 }
 0x171   : > { %s618_s19 = sshll.u32 %s614_s29, 4  ;;  %s734_s28 = sshll.u32 %s1489_s4, 7  ;;  %s1425_s19 = int_to_ptr.hbm [resolvable:$true] %s618_s19 }
 0x172   : > { %s953_s5 = sshra.s32 %s1423_s30, 4  ;;  %s955_s6 = sshrl.u32 %s734_s28, 4  ;;  %s954_s5 = int_to_ptr.vmem [resolvable:$true] %s953_s5 }
 0x173   : > { %s960_s7 = scalar_lea.vmem %s954_s5, %s955_s6  ;;  %s1043_s16 = smov [#allocation8]  }
 0x174   : > { %p961_p11 = scmp.ne.s32.totalorder %s954_s5, %s960_s7  ;;  %s964_s27 = scalar_lea.vmem %s1043_s16, 1024 }
 0x175   : > { %p966_p10 = scmp.lt.s32.totalorder %s964_s27, %s960_s7 }
 0x176   : > { %p962_p5 = pnand %p961_p11, %p1414_p13 }
 0x178   : > { %p963_p9 = pneg %p962_p5 }
 0x17a   : > { %p968_p1 = pnand %p966_p10, %p963_p9 }
 0x17c   : > { %971 = shalt.err (!%p968_p1)
}
 0x17d   : > { %s972_s23 = sshra.s32 %s1425_s19, 4  ;;  %s983_s17 = scalar_lea.hbm %s1470_s3, 2056  ;;  %s973_s23 = int_to_ptr.hbm [resolvable:$true] %s972_s23 }
 0x17e   : > { %s979_s22 = scalar_lea.hbm %s973_s23, %s955_s6  ;;  %p984_p7 = scmp.lt.s32.totalorder %s973_s23, %s1470_s3 }
 0x17f   : > { %p980_p0 = scmp.ne.s32.totalorder %s973_s23, %s979_s22  ;;  %p985_p8 = scmp.lt.s32.totalorder %s983_s17, %s979_s22 }
 0x181   : > { %p981_p2 = pnand %p980_p0, %p1414_p13  ;;  %p986_p4 = por %p985_p8, %p984_p7 }
 0x183   : > { %p982_p3 = pneg %p981_p2 }
 0x185   : > { %p987_p12 = pnand %p986_p4, %p982_p3 }
 0x187   : > { %990 = shalt.err (!%p987_p12)
}
 0x188   : > { %s1044_s29 = smov 128   ;;  %s1045_s5 = smov 8  }
 0x189   : > { %624 = dma.vmem_to_hbm [thread:$0]  (%p1414_p13), %s1423_s30, %s734_s28, %s1425_s19, %s597_s26, %s1044_s29, %s1044_s29, %s1045_s5  }
 0x18a PF: > { %p812_p6 = scmp.ge.s32.totalorder %s1034_s15, 2  ;;  %s633_s6 = sand.u32 1, %s1022_s12  }
 0x18b   : > { %p1481_p11 = scmp.ne.s32.totalorder %s1475_s25, 0  ;;  %s634_s7 = scalar_lea.sflag [#allocation4], %s633_s6 }
 0x18d   : > { %p805_p5 = pnand %p812_p6, %p1481_p11 }
 0x18f   : > { %p806_p9 = pneg %p805_p5 }
 0x191   : > { %1017 = dma.done.wait (%p806_p9), %s634_s7, 8192  }
 0x192   : > { %1019 = vsyncadd (%p806_p9), %s634_s7, 4294959104  ;;  %p17_p10 = scmp.ge.s32.totalorder %s1091_s18, 7   ;;  %s1482_s12 = smov %s1026_s13 }
 0x193   : > { %s1483_s13 = smov %s1030_s14  ;;  %s1484_s14 = smov %s1103_s21 }
 0x194   : > { %s1485_s15 = smov %s1091_s18  ;;  %19 = sbr.rel (!%p17_p10) target bundleno = 6 (0x6), region = 85 }
 0x199   :  { %640 = vsyncpa [#allocation3], 1 }
 0x19a   :  { %642 = vsyncpa [#allocation3 + $0x1], 1 }
 0x19b   :  { %643 = vsyncpa [#allocation6], 1 }
 0x19c   :  { %644 = vsyncpa [#allocation4], 1 }
 0x19d   :  { %646 = vsyncpa [#allocation4 + $0x1], 1 }

</bundles_post_ra>
